<compile_context>
chip_gen: v7x
topology: tpu7x:2x2x1
jax: 0.10.0
libtpu: 0.0.40
codegen_flags: <defaults>
</compile_context>

<pallas_src>
import jax
import jax.numpy as jnp
from jax import lax
from jax.experimental import pallas as pl
from jax.experimental.pallas import tpu as pltpu


def _round_up(x, m):
    return ((x + m - 1) // m) * m


# --------------------------------------------------------------------------
# Kernel: tiled Linear (y = x @ W^T + b) fused with row-wise L2 normalization.
# Grid: (batch tiles [parallel], dim_in tiles [arbitrary/reduction]).
# The f32 output block is the accumulator (its index map is k-invariant).
# --------------------------------------------------------------------------
def _embed_l2norm_kernel(x_ref, w_ref, b_ref, o_ref):
    k = pl.program_id(1)

    @pl.when(k == 0)
    def _init():
        o_ref[...] = jnp.zeros_like(o_ref)

    # Partial matmul over this K tile; accumulate in f32 directly in o_ref.
    o_ref[...] += jnp.dot(
        x_ref[...], w_ref[...], preferred_element_type=jnp.float32
    )

    @pl.when(k == pl.num_programs(1) - 1)
    def _finalize():
        y = o_ref[...] + b_ref[...]                       # bias
        ssq = jnp.sum(y * y, axis=1, keepdims=True)       # row ||y||^2
        o_ref[...] = y * lax.rsqrt(ssq)                   # x / ||x||_2 (no eps,
        #                                                   matches PyTorch module)


# --------------------------------------------------------------------------
# Tile planning (trace-time Python; deterministic from shapes + dtype).
# --------------------------------------------------------------------------
def _plan_k(dim_in, dim_out, compute_dtype):
    itemsize = jnp.dtype(compute_dtype).itemsize
    dout_pad = _round_up(dim_out, 128)                    # lane-dense output
    din128 = _round_up(dim_in, 128)
    # Target ~2 MiB of weight per grid step (amortize per-step overhead), but
    # keep the double-buffered weight stream under ~12 MiB of VMEM so the
    # whole pipeline fits comfortably in v7x's scoped VMEM (and v5e with the
    # explicit limit below).
    target = 2 * 1024 * 1024
    tk = _round_up(max(128, target // (dout_pad * itemsize)), 128)
    max_tk = max(128, ((12 * 1024 * 1024) // (2 * dout_pad * itemsize)) // 128 * 128)
    tk = min(tk, max_tk, din128)
    din_pad = _round_up(dim_in, tk)
    return tk, din_pad, dout_pad


def _plan_b(B, tk, dout_pad, compute_dtype):
    itemsize = jnp.dtype(compute_dtype).itemsize
    sub = 16 if itemsize == 2 else 8                      # bf16 packs 16 sublanes
    # Bigger batch tiles -> fewer full-weight re-streams from HBM. Cap by the
    # VMEM headroom for double-buffered x and output blocks.
    tb = min(256, _round_up(B, sub))
    budget = 10 * 1024 * 1024
    while tb > sub and (2 * tb * tk * itemsize + 2 * tb * dout_pad * 4) > budget:
        tb -= sub
    # Re-balance so the last batch tile isn't mostly padding.
    n_tiles = -(-_round_up(B, sub) // tb)
    tb = max(sub, _round_up(-(-B // n_tiles), sub))
    b_pad = _round_up(B, tb)
    return tb, b_pad


# --------------------------------------------------------------------------
# One-time parameter prep (hoisted out of the per-call hot path).
# --------------------------------------------------------------------------
def prepare_embed(weight, bias, compute_dtype=jnp.bfloat16):
    """Transpose/pad/cast the nn.Linear params once.

    Args:
      weight: (dim_out, dim_in)  -- PyTorch nn.Linear layout.
      bias:   (dim_out,)
      compute_dtype: dtype fed to the MXU (bf16 default; f32 for bit-exactness).
    """
    dim_out, dim_in = weight.shape
    tk, din_pad, dout_pad = _plan_k(dim_in, dim_out, compute_dtype)
    wp = jnp.zeros((din_pad, dout_pad), compute_dtype)
    wp = wp.at[:dim_in, :dim_out].set(weight.T.astype(compute_dtype))
    bp = jnp.zeros((1, dout_pad), jnp.float32)
    bp = bp.at[0, :dim_out].set(bias.astype(jnp.float32))
    return {"w": wp, "b": bp, "dim_in": dim_in, "dim_out": dim_out,
            "tk": tk, "compute_dtype": compute_dtype}


# --------------------------------------------------------------------------
# Forward: x.view(B, -1) -> Linear(dim_in, dim_out) -> L2 normalize rows.
# --------------------------------------------------------------------------
def embed_forward(x, params, *, vmem_limit_bytes=32 * 1024 * 1024):
    wp, bp = params["w"], params["b"]
    dim_in, dim_out = params["dim_in"], params["dim_out"]
    cdt = params["compute_dtype"]
    tk = params["tk"]
    din_pad, dout_pad = wp.shape

    B = x.shape[0]
    x2 = x.reshape(B, -1)
    assert x2.shape[1] == dim_in, (x2.shape, dim_in)

    tb, b_pad = _plan_b(B, tk, dout_pad, cdt)

    # Activation cast / pad only when actually needed (padding rows/cols are
    # zero, hence exact for the matmul and the L2 norm).
    x2 = x2.astype(cdt)
    if (b_pad, din_pad) != (B, dim_in):
        xp = jnp.zeros((b_pad, din_pad), cdt)
        xp = xp.at[:B, :dim_in].set(x2)
    else:
        xp = x2

    grid = (b_pad // tb, din_pad // tk)

    out = pl.pallas_call(
        _embed_l2norm_kernel,
        out_shape=jax.ShapeDtypeStruct((b_pad, dout_pad), jnp.float32),
        grid_spec=pltpu.PrefetchScalarGridSpec(
            num_scalar_prefetch=0,
            grid=grid,
            in_specs=[
                pl.BlockSpec((tb, tk), lambda i, k: (i, k)),          # x tile
                pl.BlockSpec((tk, dout_pad), lambda i, k: (k, 0)),    # W tile
                pl.BlockSpec((1, dout_pad), lambda i, k: (0, 0)),     # bias
            ],
            out_specs=pl.BlockSpec((tb, dout_pad), lambda i, k: (i, 0)),
        ),
        compiler_params=pltpu.CompilerParams(
            dimension_semantics=("parallel", "arbitrary"),
            vmem_limit_bytes=vmem_limit_bytes,
        ),
    )(xp, wp, bp)

    return out[:B, :dim_out]


# --------------------------------------------------------------------------
# Main: small deterministic example + pure-JAX reference check.
# --------------------------------------------------------------------------
if __name__ == "__main__":
    key = jax.random.PRNGKey(0)
    bsz, ch, hw = 2, 4, 16            # x: (2, 4, 16, 16) -> dim_in = 1024
    dim_in = ch * hw * hw
    dim_out = 32

    k0, k1, k2 = jax.random.split(key, 3)
    x = jax.random.normal(k0, (bsz, ch, hw, hw), jnp.float32)
    bound = 1.0 / (dim_in ** 0.5)
    weight = jax.random.uniform(k1, (dim_out, dim_in), jnp.float32,
                                minval=-bound, maxval=bound)
    bias = jax.random.uniform(k2, (dim_out,), jnp.float32,
                              minval=-bound, maxval=bound)

    # Pure-JAX reference (mirrors the PyTorch module exactly).
    y_ref = x.reshape(bsz, -1) @ weight.T + bias
    ref = y_ref / jnp.sqrt(jnp.sum(y_ref * y_ref, axis=1, keepdims=True))

    # f32 path (bit-faithful to the module up to accumulation order).
    params_f32 = prepare_embed(weight, bias, compute_dtype=jnp.float32)
    out_f32 = embed_forward(x, params_f32)
    jax.block_until_ready(out_f32)
    assert out_f32.shape == (bsz, dim_out)
    assert jnp.allclose(out_f32, ref, atol=1e-5, rtol=1e-5), \
        float(jnp.max(jnp.abs(out_f32 - ref)))

    # Default bf16 MXU-input path (f32 accumulation) -- looser tolerance.
    params_bf16 = prepare_embed(weight, bias)   # compute_dtype=bf16 default
    out_bf16 = embed_forward(x, params_bf16)
    jax.block_until_ready(out_bf16)
    assert out_bf16.shape == (bsz, dim_out)
    assert jnp.allclose(out_bf16, ref, atol=3e-2, rtol=3e-2), \
        float(jnp.max(jnp.abs(out_bf16 - ref)))

    print("KERNEL_OK")
</pallas_src>

<mosaic_0001>
module attributes {stable_mosaic.version = 11 : i64} {
  func.func @_embed_l2norm_kernel(%arg0: i32, %arg1: i32, %arg2: memref<8x1024xf32, #tpu.memory_space<vmem>>, %arg3: memref<1024x128xf32, #tpu.memory_space<vmem>>, %arg4: memref<1x128xf32, #tpu.memory_space<vmem>>, %arg5: memref<8x128xf32, #tpu.memory_space<vmem>>) attributes {dimension_semantics = [#tpu.dimension_semantics<parallel>, #tpu.dimension_semantics<arbitrary>], iteration_bounds = array<i64: 1, 1>, scalar_prefetch = 0 : i64, scratch_operands = 0 : i64, tpu.core_type = #tpu.core_type<tc>, window_params = [{transform_indices = @transform_0, window_bounds = array<i64: 8, 1024>}, {transform_indices = @transform_1, window_bounds = array<i64: 1024, 128>}, {pipeline_mode = #tpu.pipeline_mode<synchronous>, transform_indices = @transform_2, window_bounds = array<i64: 1, 128>}, {transform_indices = @transform_3, window_bounds = array<i64: 8, 128>}]} {
    %c0_i32 = arith.constant 0 : i32
    %0 = arith.cmpi eq, %arg1, %c0_i32 : i32
    %1 = arith.extui %0 : i1 to i32
    %c0_i32_0 = arith.constant 0 : i32
    %2 = arith.cmpi ne, %1, %c0_i32_0 : i32
    scf.if %2 {
      %cst_10 = arith.constant 0.000000e+00 : f32
      %12 = vector.broadcast %cst_10 : f32 to vector<8x128xf32>
      %c0_11 = arith.constant 0 : index
      %c0_12 = arith.constant 0 : index
      %13 = vector.load %arg5[%c0_11, %c0_12] : memref<8x128xf32, #tpu.memory_space<vmem>>, vector<8x128xf32>
      tpu.vector_store %arg5[%c0_11, %c0_12], %12 {strides = array<i32>} : memref<8x128xf32, #tpu.memory_space<vmem>>, vector<8x128xf32>,
    } else {
    }
    %c0 = arith.constant 0 : index
    %c0_1 = arith.constant 0 : index
    %3 = vector.load %arg5[%c0, %c0_1] : memref<8x128xf32, #tpu.memory_space<vmem>>, vector<8x128xf32>
    %c0_2 = arith.constant 0 : index
    %c0_3 = arith.constant 0 : index
    %4 = vector.load %arg2[%c0_2, %c0_3] : memref<8x1024xf32, #tpu.memory_space<vmem>>, vector<8x1024xf32>
    %c0_4 = arith.constant 0 : index
    %c0_5 = arith.constant 0 : index
    %5 = vector.load %arg3[%c0_4, %c0_5] : memref<1024x128xf32, #tpu.memory_space<vmem>>, vector<1024x128xf32>
    %cst = arith.constant dense<0.000000e+00> : vector<8x128xf32>
    %6 = tpu.matmul %4, %5, %cst {dimension_numbers = #tpu.dot_dimension_numbers<[1], [0], [0], [1], [0, 0, 1, 1], [], []>} : vector<8x1024xf32>, vector<1024x128xf32>, vector<8x128xf32> -> vector<8x128xf32>
    %7 = arith.addf %3, %6 : vector<8x128xf32>
    %c0_6 = arith.constant 0 : index
    %c0_7 = arith.constant 0 : index
    %8 = vector.load %arg5[%c0_6, %c0_7] : memref<8x128xf32, #tpu.memory_space<vmem>>, vector<8x128xf32>
    tpu.vector_store %arg5[%c0_6, %c0_7], %7 {strides = array<i32>} : memref<8x128xf32, #tpu.memory_space<vmem>>, vector<8x128xf32>,
    %c0_i32_8 = arith.constant 0 : i32
    %9 = arith.cmpi eq, %arg1, %c0_i32_8 : i32
    %10 = arith.extui %9 : i1 to i32
    %c0_i32_9 = arith.constant 0 : i32
    %11 = arith.cmpi ne, %10, %c0_i32_9 : i32
    scf.if %11 {
      %c0_10 = arith.constant 0 : index
      %c0_11 = arith.constant 0 : index
      %12 = vector.load %arg5[%c0_10, %c0_11] : memref<8x128xf32, #tpu.memory_space<vmem>>, vector<8x128xf32>
      %c0_12 = arith.constant 0 : index
      %c0_13 = arith.constant 0 : index
      %13 = vector.load %arg4[%c0_12, %c0_13] : memref<1x128xf32, #tpu.memory_space<vmem>>, vector<1x128xf32>
      %14 = vector.broadcast %13 : vector<1x128xf32> to vector<8x128xf32>
      %15 = arith.addf %12, %14 : vector<8x128xf32>
      %16 = arith.mulf %15, %15 : vector<8x128xf32>
      %cst_14 = arith.constant dense<0.000000e+00> : vector<8xf32>
      %17 = vector.multi_reduction <add>, %16, %cst_14 [1] : vector<8x128xf32> to vector<8xf32>
      %18 = vector.shape_cast %17 : vector<8xf32> to vector<8x1xf32>
      %19 = math.rsqrt %18 : vector<8x1xf32>
      %20 = vector.broadcast %19 : vector<8x1xf32> to vector<8x128xf32>
      %21 = arith.mulf %15, %20 : vector<8x128xf32>
      %c0_15 = arith.constant 0 : index
      %c0_16 = arith.constant 0 : index
      %22 = vector.load %arg5[%c0_15, %c0_16] : memref<8x128xf32, #tpu.memory_space<vmem>>, vector<8x128xf32>
      tpu.vector_store %arg5[%c0_15, %c0_16], %21 {strides = array<i32>} : memref<8x128xf32, #tpu.memory_space<vmem>>, vector<8x128xf32>,
    } else {
    }
    return
  }
  func.func @transform_0(%arg0: i32, %arg1: i32) -> (i32, i32) {
    %c0_i32 = arith.constant 0 : i32
    return %arg0, %arg1 : i32, i32
  }
  func.func @transform_1(%arg0: i32, %arg1: i32) -> (i32, i32) {
    %c0_i32 = arith.constant 0 : i32
    %c0_i32_0 = arith.constant 0 : i32
    return %arg1, %c0_i32 : i32, i32
  }
  func.func @transform_2(%arg0: i32, %arg1: i32) -> (i32, i32) {
    %c0_i32 = arith.constant 0 : i32
    %c0_i32_0 = arith.constant 0 : i32
    %c0_i32_1 = arith.constant 0 : i32
    return %c0_i32, %c0_i32_0 : i32, i32
  }
  func.func @transform_3(%arg0: i32, %arg1: i32) -> (i32, i32) {
    %c0_i32 = arith.constant 0 : i32
    %c0_i32_0 = arith.constant 0 : i32
    return %arg0, %c0_i32 : i32, i32
  }
}

</mosaic_0001>

<bundles_post_ra>
// kernel: tpu_custom_call.1
= control target key start
LH: loop header
LB: loop body
LE: loop exit
PB: predicated region body
PF: predicated region fallthrough
CT: control target
= control target key end

     0   :  { %8 = vsyncpa [#allocation3], 0  ;;  %s919_s0 = inlined_call_operand.hbm [shape: f32[8,1024], index: 0, kind: input, shape index: {}]   ;;  %s920_s1 = inlined_call_operand.hbm [shape: f32[1024,128], index: 1, kind: input, shape index: {}]   ;;  %s921_s2 = inlined_call_operand.vmem [shape: f32[1,128], index: 2, kind: input, shape index: {}]   ;;  %s922_s3 = inlined_call_operand.hbm [shape: f32[8,128], index: 3, kind: output, shape index: {}]  }
   0x1   :  { %9 = vsyncpa [#allocation6], 0 }
   0x2   :  { %10 = vsyncpa [#allocation4], 0  ;;  %s848_s12 = smov [#allocation2]   ;;  %s849_s14 = smov [#allocation5]  }
   0x3   :  { %s17_s13 = sshll.u32 %s848_s12, 4  ;;  %s26_s15 = sshll.u32 %s849_s14, 4  ;;  %s18_s13 = int_to_ptr.vmem [resolvable:$true] %s17_s13  ;;  %s873_s15 = int_to_ptr.vmem [resolvable:$true] %s26_s15 }
   0x4   :  { %s776_s18 = scalar_lea.hbm %s919_s0, 1024 }
   0x5   :  { %p777_p0 = scmp.ne.s32.totalorder %s919_s0, %s776_s18  ;;  %p780_p1 = scmp.lt.u32.totalorder %s776_s18, %s919_s0 }
   0x7   :  { %p782_p2 = pnand %p780_p1, %p777_p0 }
   0x9   :  { %785 = shalt.err (!%p782_p2)
}
   0xa   :  { %s786_s23 = scalar_lea.vmem %s18_s13, 1024  ;;  %p791_p4 = scmp.lt.s32.totalorder %s18_s13, %s18_s13 }
   0xb   :  { %p787_p3 = scmp.ne.s32.totalorder %s18_s13, %s786_s23  ;;  %p792_p5 = scmp.lt.s32.totalorder %s786_s23, %s786_s23 }
   0xd   :  { %p793_p6 = por %p792_p5, %p791_p4 }
   0xf   :  { %p794_p7 = pnand %p793_p6, %p787_p3 }
  0x11   :  { %797 = shalt.err (!%p794_p7)
}
  0x12   :  { %20 = dma.hbm_to_vmem [thread:$0]  %s919_s0, 1024, %s18_s13, [#allocation3]  }
  0x13   :  { %s798_s28 = scalar_lea.hbm %s920_s1, 16384 }
  0x14   :  { %p799_p8 = scmp.ne.s32.totalorder %s920_s1, %s798_s28  ;;  %p802_p9 = scmp.lt.u32.totalorder %s798_s28, %s920_s1 }
  0x16   :  { %p804_p10 = pnand %p802_p9, %p799_p8 }
  0x18   :  { %807 = shalt.err (!%p804_p10)
}
  0x19   :  { %s808_s6 = scalar_lea.vmem %s873_s15, 16384  ;;  %p813_p12 = scmp.lt.s32.totalorder %s873_s15, %s873_s15 }
  0x1a   :  { %p809_p11 = scmp.ne.s32.totalorder %s873_s15, %s808_s6  ;;  %p814_p13 = scmp.lt.s32.totalorder %s808_s6, %s808_s6 }
  0x1c   :  { %p815_p0 = por %p814_p13, %p813_p12 }
  0x1e   :  { %p816_p1 = pnand %p815_p0, %p809_p11 }
  0x20   :  { %819 = shalt.err (!%p816_p1)
}
  0x21   :  { %s850_s0 = smov 128   ;;  %s851_s7 = smov 8  }
  0x22   :  { %32 = dma.hbm_to_vmem [thread:$0]  %s920_s1, 16384, %s873_s15, [#allocation6], %s850_s0, %s850_s0, %s851_s7  }
  0x23   :  { %842 = dma.done.wait [#allocation3], 1024  }
  0x24   :  { %843 = vsyncadd [#allocation3], 4294966272 }
  0x25   :  { %844 = dma.done.wait [#allocation6], 16384  }
  0x26   :  { %845 = vsyncadd [#allocation6], 4294950912  ;;  %v71_v0 = vld [vmem:[#allocation5 + $0x80] sm:$0xff]  ;;  %v72_v1 = vld [vmem:[#allocation5 + $0x88] sm:$0xff]  ;;  %s852_s11 = smov [#allocation7]  }
  0x27   :  { %v103_v2 = vld [vmem:[#allocation5 + $0x180] sm:$0xff]  ;;  %v640_v3 = vpack.c.bf16 %v72_v1, %v71_v0  ;;  %v104_v4 = vld [vmem:[#allocation5 + $0x188] sm:$0xff]  ;;  %v73_v11 = vld [vmem:[#allocation5 + $0x90] sm:$0xff]  ;;  %s489_s12 = sshll.u32 %s852_s11, 4  ;;  %s490_s12 = int_to_ptr.vmem [resolvable:$true] %s489_s12 }
  0x28   :  { %v55_v5 = vld [vmem:[#allocation5] sm:$0xff]  ;;  %v56_v6 = vld [vmem:[#allocation5 + $0x8] sm:$0xff]  ;;  %v672_v7 = vpack.c.bf16 %v104_v4, %v103_v2  ;;  %v74_v13 = vld [vmem:[#allocation5 + $0x98] sm:$0xff]  ;;  %s820_s13 = scalar_lea.vmem %s490_s12, 128  ;;  %p825_p3 = scmp.lt.s32.totalorder %s490_s12, %s490_s12 }
  0x29   :  { %v642_v8 = vpack.c.bf16 %v56_v6, %v55_v5  ;;  %v87_v9 = vld [vmem:[#allocation5 + $0x100] sm:$0xff]  ;;  %v88_v10 = vld [vmem:[#allocation5 + $0x108] sm:$0xff]  ;;  %641 = vmatprep.subr.bf16.mxu0 %v640_v3  ;;  %v105_v14 = vld [vmem:[#allocation5 + $0x190] sm:$0xff]  ;;  %v644_v16 = vpack.c.bf16 %v74_v13, %v73_v11  ;;  %p821_p2 = scmp.ne.s32.totalorder %s490_s12, %s820_s13  ;;  %p826_p4 = scmp.lt.s32.totalorder %s820_s13, %s820_s13 }
  0x2a   :  { %v674_v12 = vpack.c.bf16 %v88_v10, %v87_v9  ;;  %v106_v15 = vld [vmem:[#allocation5 + $0x198] sm:$0xff]  ;;  %673 = vmatprep.subr.bf16.mxu1 %v672_v7  ;;  %v57_v18 = vld [vmem:[#allocation5 + $0x10] sm:$0xff]  ;;  %v75_v23 = vld [vmem:[#allocation5 + $0xa0] sm:$0xff] }
  0x2b   :  { %643 = vmatpush3.bf16.msra.mxu0 %v642_v8  ;;  %v676_v17 = vpack.c.bf16 %v106_v15, %v105_v14  ;;  %v58_v19 = vld [vmem:[#allocation5 + $0x18] sm:$0xff]  ;;  %v89_v20 = vld [vmem:[#allocation5 + $0x110] sm:$0xff]  ;;  %v76_v24 = vld [vmem:[#allocation5 + $0xa8] sm:$0xff]  ;;  %p827_p5 = por %p826_p4, %p825_p3 }
  0x2c   :  { %675 = vmatpush3.bf16.msra.mxu1 %v674_v12  ;;  %v646_v21 = vpack.c.bf16 %v58_v19, %v57_v18  ;;  %v90_v22 = vld [vmem:[#allocation5 + $0x118] sm:$0xff]  ;;  %645 = vmatprep.subr.bf16.mxu0 %v644_v16  ;;  %v648_v26 = vpack.c.bf16 %v76_v24, %v75_v23  ;;  %v107_v27 = vld [vmem:[#allocation5 + $0x1a0] sm:$0xff]  ;;  %v108_v28 = vld [vmem:[#allocation5 + $0x1a8] sm:$0xff] }
  0x2d   :  { %677 = vmatprep.subr.bf16.mxu1 %v676_v17  ;;  %v678_v25 = vpack.c.bf16 %v90_v22, %v89_v20  ;;  %v59_v29 = vld [vmem:[#allocation5 + $0x20] sm:$0xff]  ;;  %v680_v30 = vpack.c.bf16 %v108_v28, %v107_v27  ;;  %v60_v31 = vld [vmem:[#allocation5 + $0x28] sm:$0xff]  ;;  %v77_v35 = vld [vmem:[#allocation5 + $0xb0] sm:$0xff]  ;;  %p828_p6 = pnand %p827_p5, %p821_p2 }
  0x2e   :  { %v91_v32 = vld [vmem:[#allocation5 + $0x120] sm:$0xff]  ;;  %v92_v33 = vld [vmem:[#allocation5 + $0x128] sm:$0xff]  ;;  %v650_v34 = vpack.c.bf16 %v60_v31, %v59_v29  ;;  %v78_v36 = vld [vmem:[#allocation5 + $0xb8] sm:$0xff] }
  0x2f   :  { %647 = vmatpush3.bf16.msra.mxu0 %v646_v21  ;;  %v109_v37 = vld [vmem:[#allocation5 + $0x1b0] sm:$0xff]  ;;  %v682_v38 = vpack.c.bf16 %v92_v33, %v91_v32  ;;  %v652_v39 = vpack.c.bf16 %v78_v36, %v77_v35  ;;  %v110_v40 = vld [vmem:[#allocation5 + $0x1b8] sm:$0xff]  ;;  %v79_v46 = vld [vmem:[#allocation5 + $0xc0] sm:$0xff] }
  0x30   :  { %679 = vmatpush3.bf16.msra.mxu1 %v678_v25  ;;  %649 = vmatprep.subr.bf16.mxu0 %v648_v26  ;;  %v61_v41 = vld [vmem:[#allocation5 + $0x30] sm:$0xff]  ;;  %v62_v42 = vld [vmem:[#allocation5 + $0x38] sm:$0xff]  ;;  %v684_v43 = vpack.c.bf16 %v110_v40, %v109_v37  ;;  %v80_v47 = vld [vmem:[#allocation5 + $0xc8] sm:$0xff] }
  0x31   :  { %681 = vmatprep.subr.bf16.mxu1 %v680_v30  ;;  %v93_v44 = vld [vmem:[#allocation5 + $0x130] sm:$0xff]  ;;  %v94_v45 = vld [vmem:[#allocation5 + $0x138] sm:$0xff]  ;;  %v111_v48 = vld [vmem:[#allocation5 + $0x1c0] sm:$0xff]  ;;  %v654_v50 = vpack.c.bf16 %v62_v42, %v61_v41  ;;  %v656_v52 = vpack.c.bf16 %v80_v47, %v79_v46 }
  0x32   :  { %v112_v49 = vld [vmem:[#allocation5 + $0x1c8] sm:$0xff]  ;;  %v686_v51 = vpack.c.bf16 %v94_v45, %v93_v44  ;;  %v63_v53 = vld [vmem:[#allocation5 + $0x40] sm:$0xff]  ;;  %v81_v58 = vld [vmem:[#allocation5 + $0xd0] sm:$0xff] }
  0x33   :  { %651 = vmatpush3.bf16.msra.mxu0 %v650_v34  ;;  %v64_v54 = vld [vmem:[#allocation5 + $0x48] sm:$0xff]  ;;  %v95_v55 = vld [vmem:[#allocation5 + $0x140] sm:$0xff]  ;;  %v688_v56 = vpack.c.bf16 %v112_v49, %v111_v48  ;;  %v82_v59 = vld [vmem:[#allocation5 + $0xd8] sm:$0xff] }
  0x34   :  { %683 = vmatpush3.bf16.msra.mxu1 %v682_v38  ;;  %653 = vmatprep.subr.bf16.mxu0 %v652_v39  ;;  %v96_v57 = vld [vmem:[#allocation5 + $0x148] sm:$0xff]  ;;  %v113_v60 = vld [vmem:[#allocation5 + $0x1d0] sm:$0xff]  ;;  %v114_v61 = vld [vmem:[#allocation5 + $0x1d8] sm:$0xff]  ;;  %v658_v62 = vpack.c.bf16 %v64_v54, %v63_v53  ;;  %v660_v0 = vpack.c.bf16 %v82_v59, %v81_v58 }
  0x35   :  { %685 = vmatprep.subr.bf16.mxu1 %v684_v43  ;;  %v690_v63 = vpack.c.bf16 %v96_v57, %v95_v55  ;;  %v65_v1 = vld [vmem:[#allocation5 + $0x50] sm:$0xff]  ;;  %v66_v2 = vld [vmem:[#allocation5 + $0x58] sm:$0xff]  ;;  %v692_v4 = vpack.c.bf16 %v114_v61, %v113_v60  ;;  %v83_v6 = vld [vmem:[#allocation5 + $0xe0] sm:$0xff] }
  0x36   :  { %v97_v3 = vld [vmem:[#allocation5 + $0x150] sm:$0xff]  ;;  %v98_v5 = vld [vmem:[#allocation5 + $0x158] sm:$0xff]  ;;  %v84_v7 = vld [vmem:[#allocation5 + $0xe8] sm:$0xff]  ;;  %v662_v10 = vpack.c.bf16 %v66_v2, %v65_v1 }
  0x37   :  { %655 = vmatpush3.bf16.msra.mxu0 %v654_v50  ;;  %v115_v8 = vld [vmem:[#allocation5 + $0x1e0] sm:$0xff]  ;;  %v116_v9 = vld [vmem:[#allocation5 + $0x1e8] sm:$0xff]  ;;  %v694_v13 = vpack.c.bf16 %v98_v5, %v97_v3  ;;  %v664_v14 = vpack.c.bf16 %v84_v7, %v83_v6  ;;  %v50_v17 = vld [vmem:[#allocation2 + $0x18] sm:$0xff] }
  0x38   :  { %687 = vmatpush3.bf16.msra.mxu1 %v686_v51  ;;  %657 = vmatprep.subr.bf16.mxu0 %v656_v52  ;;  %v67_v11 = vld [vmem:[#allocation5 + $0x60] sm:$0xff]  ;;  %v68_v12 = vld [vmem:[#allocation5 + $0x68] sm:$0xff]  ;;  %v696_v18 = vpack.c.bf16 %v116_v9, %v115_v8  ;;  %v85_v20 = vld [vmem:[#allocation5 + $0xf0] sm:$0xff] }
  0x39   :  { %689 = vmatprep.subr.bf16.mxu1 %v688_v56  ;;  %v99_v15 = vld [vmem:[#allocation5 + $0x160] sm:$0xff]  ;;  %v48_v16 = vld [vmem:[#allocation2 + $0x8] sm:$0xff]  ;;  %v86_v21 = vld [vmem:[#allocation5 + $0xf8] sm:$0xff]  ;;  %317 = vmatprep.mubr.f32.mxu1 %v50_v17  ;;  %v666_v24 = vpack.c.bf16 %v68_v12, %v67_v11 }
  0x3a   :  { %v100_v19 = vld [vmem:[#allocation5 + $0x168] sm:$0xff]  ;;  %247 = vmatprep.mubr.f32.mxu0 %v48_v16  ;;  %v117_v22 = vld [vmem:[#allocation5 + $0x1f0] sm:$0xff]  ;;  %v118_v23 = vld [vmem:[#allocation5 + $0x1f8] sm:$0xff]  ;;  %v668_v26 = vpack.c.bf16 %v86_v21, %v85_v20 }
  0x3b   :  { %659 = vmatpush3.bf16.msra.mxu0 %v658_v62  ;;  %v698_v25 = vpack.c.bf16 %v100_v19, %v99_v15  ;;  %v69_v27 = vld [vmem:[#allocation5 + $0x70] sm:$0xff]  ;;  %v70_v28 = vld [vmem:[#allocation5 + $0x78] sm:$0xff]  ;;  %v700_v30 = vpack.c.bf16 %v118_v23, %v117_v22  ;;  %v135_v32 = vld [vmem:[#allocation5 + $0x280] sm:$0xff] }
  0x3c   :  { %691 = vmatpush3.bf16.msra.mxu1 %v690_v63  ;;  %661 = vmatprep.subr.bf16.mxu0 %v660_v0  ;;  %v101_v29 = vld [vmem:[#allocation5 + $0x170] sm:$0xff]  ;;  %v102_v31 = vld [vmem:[#allocation5 + $0x178] sm:$0xff]  ;;  %v136_v33 = vld [vmem:[#allocation5 + $0x288] sm:$0xff]  ;;  %v670_v36 = vpack.c.bf16 %v70_v28, %v69_v27 }
  0x3d   :  { %693 = vmatprep.subr.bf16.mxu1 %v692_v4  ;;  %v167_v34 = vld [vmem:[#allocation5 + $0x380] sm:$0xff]  ;;  %v168_v35 = vld [vmem:[#allocation5 + $0x388] sm:$0xff]  ;;  %v702_v37 = vpack.c.bf16 %v102_v31, %v101_v29  ;;  %v704_v38 = vpack.c.bf16 %v136_v33, %v135_v32  ;;  %v137_v44 = vld [vmem:[#allocation5 + $0x290] sm:$0xff] }
  0x3e   :  { %v119_v39 = vld [vmem:[#allocation5 + $0x200] sm:$0xff]  ;;  %v120_v40 = vld [vmem:[#allocation5 + $0x208] sm:$0xff]  ;;  %v736_v42 = vpack.c.bf16 %v168_v35, %v167_v34  ;;  %v138_v45 = vld [vmem:[#allocation5 + $0x298] sm:$0xff] }
  0x3f   :  { %663 = vmatpush3.bf16.msra.mxu0 %v662_v10  ;;  %v151_v41 = vld [vmem:[#allocation5 + $0x300] sm:$0xff]  ;;  %v152_v43 = vld [vmem:[#allocation5 + $0x308] sm:$0xff]  ;;  %v169_v46 = vld [vmem:[#allocation5 + $0x390] sm:$0xff]  ;;  %v706_v50 = vpack.c.bf16 %v120_v40, %v119_v39  ;;  %v708_v52 = vpack.c.bf16 %v138_v45, %v137_v44 }
  0x40   :  { %695 = vmatpush3.bf16.msra.mxu1 %v694_v13  ;;  %665 = vmatprep.subr.bf16.mxu0 %v664_v14  ;;  %v170_v47 = vld [vmem:[#allocation5 + $0x398] sm:$0xff]  ;;  %v47_v48 = vld [vmem:[#allocation2] sm:$0xff]  ;;  %v49_v49 = vld [vmem:[#allocation2 + $0x10] sm:$0xff]  ;;  %v738_v51 = vpack.c.bf16 %v152_v43, %v151_v41 }
  0x41   :  { %697 = vmatprep.subr.bf16.mxu1 %v696_v18  ;;  %v121_v53 = vld [vmem:[#allocation5 + $0x210] sm:$0xff]  ;;  %v122_v54 = vld [vmem:[#allocation5 + $0x218] sm:$0xff]  ;;  %v740_v56 = vpack.c.bf16 %v170_v47, %v169_v46  ;;  %v139_v58 = vld [vmem:[#allocation5 + $0x2a0] sm:$0xff] }
  0x42   :  { %v153_v55 = vld [vmem:[#allocation5 + $0x310] sm:$0xff]  ;;  %v154_v57 = vld [vmem:[#allocation5 + $0x318] sm:$0xff]  ;;  %v140_v59 = vld [vmem:[#allocation5 + $0x2a8] sm:$0xff]  ;;  %v710_v62 = vpack.c.bf16 %v122_v54, %v121_v53 }
  0x43   :  { %667 = vmatpush3.bf16.msra.mxu0 %v666_v24  ;;  %v171_v60 = vld [vmem:[#allocation5 + $0x3a0] sm:$0xff]  ;;  %v172_v61 = vld [vmem:[#allocation5 + $0x3a8] sm:$0xff]  ;;  %v742_v63 = vpack.c.bf16 %v154_v57, %v153_v55  ;;  %v712_v0 = vpack.c.bf16 %v140_v59, %v139_v58  ;;  %v141_v6 = vld [vmem:[#allocation5 + $0x2b0] sm:$0xff] }
  0x44   :  { %699 = vmatpush3.bf16.msra.mxu1 %v698_v25  ;;  %669 = vmatprep.subr.bf16.mxu0 %v668_v26  ;;  %v123_v1 = vld [vmem:[#allocation5 + $0x220] sm:$0xff]  ;;  %v124_v2 = vld [vmem:[#allocation5 + $0x228] sm:$0xff]  ;;  %v744_v4 = vpack.c.bf16 %v172_v61, %v171_v60  ;;  %v142_v7 = vld [vmem:[#allocation5 + $0x2b8] sm:$0xff] }
  0x45   :  { %701 = vmatprep.subr.bf16.mxu1 %v700_v30  ;;  %v155_v3 = vld [vmem:[#allocation5 + $0x320] sm:$0xff]  ;;  %v156_v5 = vld [vmem:[#allocation5 + $0x328] sm:$0xff]  ;;  %v173_v8 = vld [vmem:[#allocation5 + $0x3b0] sm:$0xff]  ;;  %v714_v10 = vpack.c.bf16 %v124_v2, %v123_v1  ;;  %v716_v12 = vpack.c.bf16 %v142_v7, %v141_v6 }
  0x46   :  { %v174_v9 = vld [vmem:[#allocation5 + $0x3b8] sm:$0xff]  ;;  %v746_v11 = vpack.c.bf16 %v156_v5, %v155_v3  ;;  %v125_v13 = vld [vmem:[#allocation5 + $0x230] sm:$0xff]  ;;  %v143_v18 = vld [vmem:[#allocation5 + $0x2c0] sm:$0xff] }
  0x47   :  { %671 = vmatpush3.bf16.msra.mxu0 %v670_v36  ;;  %v126_v14 = vld [vmem:[#allocation5 + $0x238] sm:$0xff]  ;;  %v157_v15 = vld [vmem:[#allocation5 + $0x330] sm:$0xff]  ;;  %v748_v16 = vpack.c.bf16 %v174_v9, %v173_v8  ;;  %v144_v19 = vld [vmem:[#allocation5 + $0x2c8] sm:$0xff] }
  0x48   :  { %703 = vmatpush3.bf16.msra.mxu1 %v702_v37  ;;  %705 = vmatprep.subr.bf16.mxu0 %v704_v38  ;;  %v158_v17 = vld [vmem:[#allocation5 + $0x338] sm:$0xff]  ;;  %v175_v20 = vld [vmem:[#allocation5 + $0x3c0] sm:$0xff]  ;;  %v176_v21 = vld [vmem:[#allocation5 + $0x3c8] sm:$0xff]  ;;  %v718_v22 = vpack.c.bf16 %v126_v14, %v125_v13  ;;  %v720_v26 = vpack.c.bf16 %v144_v19, %v143_v18 }
  0x49   :  { %737 = vmatprep.subr.bf16.mxu1 %v736_v42  ;;  %v52_v23 = vld [vmem:[#allocation2 + $0x28] sm:$0xff]  ;;  %v54_v24 = vld [vmem:[#allocation2 + $0x38] sm:$0xff]  ;;  %v750_v25 = vpack.c.bf16 %v158_v17, %v157_v15  ;;  %v127_v27 = vld [vmem:[#allocation5 + $0x240] sm:$0xff]  ;;  %v752_v30 = vpack.c.bf16 %v176_v21, %v175_v20 }
  0x4a   :  { %248 = vmatmul.mubr.f32.vlgmr.msra.gmra.mrb[0].mxu0 %v47_v48  ;;  %v128_v28 = vld [vmem:[#allocation5 + $0x248] sm:$0xff]  ;;  %v159_v29 = vld [vmem:[#allocation5 + $0x340] sm:$0xff]  ;;  %v145_v32 = vld [vmem:[#allocation5 + $0x2d0] sm:$0xff] }
  0x4b   :  { %318 = vmatmul.mubr.f32.vlgmr.msra.gmra.mrb[0].mxu1 %v49_v49  ;;  %707 = vmatpush3.bf16.msra.mxu0 %v706_v50  ;;  %v160_v31 = vld [vmem:[#allocation5 + $0x348] sm:$0xff]  ;;  %v146_v33 = vld [vmem:[#allocation5 + $0x2d8] sm:$0xff]  ;;  %v177_v34 = vld [vmem:[#allocation5 + $0x3d0] sm:$0xff]  ;;  %v722_v36 = vpack.c.bf16 %v128_v28, %v127_v27 }
  0x4c   :  { %739 = vmatpush3.bf16.msra.mxu1 %v738_v51  ;;  %709 = vmatprep.subr.bf16.mxu0 %v708_v52  ;;  %v178_v35 = vld [vmem:[#allocation5 + $0x3d8] sm:$0xff]  ;;  %v754_v37 = vpack.c.bf16 %v160_v31, %v159_v29  ;;  %v724_v38 = vpack.c.bf16 %v146_v33, %v145_v32  ;;  %v129_v39 = vld [vmem:[#allocation5 + $0x250] sm:$0xff]  ;;  %v147_v44 = vld [vmem:[#allocation5 + $0x2e0] sm:$0xff] }
  0x4d   :  { %741 = vmatprep.subr.bf16.mxu1 %v740_v56  ;;  %387 = vmatprep.mubr.f32.mxu0 %v52_v23  ;;  %v130_v40 = vld [vmem:[#allocation5 + $0x258] sm:$0xff]  ;;  %v161_v41 = vld [vmem:[#allocation5 + $0x350] sm:$0xff]  ;;  %v756_v42 = vpack.c.bf16 %v178_v35, %v177_v34  ;;  %v148_v45 = vld [vmem:[#allocation5 + $0x2e8] sm:$0xff] }
  0x4e   :  { %457 = vmatprep.mubr.f32.mxu1 %v54_v24  ;;  %v162_v43 = vld [vmem:[#allocation5 + $0x358] sm:$0xff]  ;;  %v179_v46 = vld [vmem:[#allocation5 + $0x3e0] sm:$0xff]  ;;  %v180_v47 = vld [vmem:[#allocation5 + $0x3e8] sm:$0xff]  ;;  %v726_v48 = vpack.c.bf16 %v130_v40, %v129_v39  ;;  %v728_v50 = vpack.c.bf16 %v148_v45, %v147_v44 }
  0x4f   :  { %711 = vmatpush3.bf16.msra.mxu0 %v710_v62  ;;  %v758_v49 = vpack.c.bf16 %v162_v43, %v161_v41  ;;  %v131_v51 = vld [vmem:[#allocation5 + $0x260] sm:$0xff]  ;;  %v132_v52 = vld [vmem:[#allocation5 + $0x268] sm:$0xff]  ;;  %v760_v54 = vpack.c.bf16 %v180_v47, %v179_v46  ;;  %v149_v56 = vld [vmem:[#allocation5 + $0x2f0] sm:$0xff] }
  0x50   :  { %743 = vmatpush3.bf16.msra.mxu1 %v742_v63  ;;  %713 = vmatprep.subr.bf16.mxu0 %v712_v0  ;;  %v163_v53 = vld [vmem:[#allocation5 + $0x360] sm:$0xff]  ;;  %v164_v55 = vld [vmem:[#allocation5 + $0x368] sm:$0xff]  ;;  %v150_v57 = vld [vmem:[#allocation5 + $0x2f8] sm:$0xff]  ;;  %v730_v60 = vpack.c.bf16 %v132_v52, %v131_v51 }
  0x51   :  { %745 = vmatprep.subr.bf16.mxu1 %v744_v4  ;;  %v181_v58 = vld [vmem:[#allocation5 + $0x3f0] sm:$0xff]  ;;  %v182_v59 = vld [vmem:[#allocation5 + $0x3f8] sm:$0xff]  ;;  %v762_v61 = vpack.c.bf16 %v164_v55, %v163_v53  ;;  %v732_v62 = vpack.c.bf16 %v150_v57, %v149_v56  ;;  %v51_v6 = vld [vmem:[#allocation2 + $0x20] sm:$0xff] }
  0x52   :  { %v133_v63 = vld [vmem:[#allocation5 + $0x270] sm:$0xff]  ;;  %v134_v0 = vld [vmem:[#allocation5 + $0x278] sm:$0xff]  ;;  %v764_v1 = vpack.c.bf16 %v182_v59, %v181_v58  ;;  %v499_v23 = vld [vmem:[%s921_s2] ss:$0 sm:$0xff] }
  0x53   :  { %715 = vmatpush3.bf16.msra.mxu0 %v714_v10  ;;  %v165_v2 = vld [vmem:[#allocation5 + $0x370] sm:$0xff]  ;;  %v166_v3 = vld [vmem:[#allocation5 + $0x378] sm:$0xff]  ;;  %v734_v4 = vpack.c.bf16 %v134_v0, %v133_v63 }
  0x54   :  { %747 = vmatpush3.bf16.msra.mxu1 %v746_v11  ;;  %717 = vmatprep.subr.bf16.mxu0 %v716_v12  ;;  %v766_v5 = vpack.c.bf16 %v166_v3, %v165_v2  ;;  %v53_v7 = vld [vmem:[#allocation2 + $0x30] sm:$0xff] }
  0x55   :  { %749 = vmatprep.subr.bf16.mxu1 %v748_v16 }
  0x57   :  { %719 = vmatpush3.bf16.msra.mxu0 %v718_v22 }
  0x58   :  { %751 = vmatpush3.bf16.msra.mxu1 %v750_v25  ;;  %721 = vmatprep.subr.bf16.mxu0 %v720_v26 }
  0x59   :  { %753 = vmatprep.subr.bf16.mxu1 %v752_v30 }
  0x5b   :  { %723 = vmatpush3.bf16.msra.mxu0 %v722_v36 }
  0x5c   :  { %755 = vmatpush3.bf16.msra.mxu1 %v754_v37  ;;  %725 = vmatprep.subr.bf16.mxu0 %v724_v38 }
  0x5d   :  { %757 = vmatprep.subr.bf16.mxu1 %v756_v42 }
  0x5f   :  { %727 = vmatpush3.bf16.msra.mxu0 %v726_v48 }
  0x60   :  { %759 = vmatpush3.bf16.msra.mxu1 %v758_v49  ;;  %729 = vmatprep.subr.bf16.mxu0 %v728_v50 }
  0x61   :  { %761 = vmatprep.subr.bf16.mxu1 %v760_v54 }
  0x63   :  { %731 = vmatpush3.bf16.msra.mxu0 %v730_v60 }
  0x64   :  { %763 = vmatpush3.bf16.msra.mxu1 %v762_v61  ;;  %733 = vmatprep.subr.bf16.mxu0 %v732_v62 }
  0x65   :  { %765 = vmatprep.subr.bf16.mxu1 %v764_v1 }
  0x67   :  { %735 = vmatpush3.bf16.msra.mxu0 %v734_v4 }
  0x68   :  { %767 = vmatpush3.bf16.msra.mxu1 %v766_v5 }
  0x6a   :  { %388 = vmatmul.mubr.f32.vlgmr.msra.gmra.mrb[2].mxu0 %v51_v6 }
  0x6b   :  { %458 = vmatmul.mubr.f32.vlgmr.msra.gmra.mrb[2].mxu1 %v53_v7 }
 0x11d   :  { %v532_v8 = vpop.f32.mrb[0].mxu0 }
 0x11e   :  { %v567_v9 = vpop.f32.mrb[0].mxu1  ;;  %v533_v10 = vpop.f32.mrb[1].mxu0 }
 0x11f   :  { %v534_v11 = vadd.f32 %v533_v10, %v532_v8  ;;  %v568_v12 = vpop.f32.mrb[1].mxu1 }
 0x120   :  { %v569_v13 = vadd.f32 %v568_v12, %v567_v9 }
 0x122   :  { %v320_v14 = vadd.f32 %v569_v13, %v534_v11 }
 0x13d   :  { %v602_v15 = vpop.f32.mrb[2].mxu0 }
 0x13e   :  { %v603_v16 = vpop.f32.mrb[3].mxu0  ;;  %v637_v17 = vpop.f32.mrb[2].mxu1 }
 0x13f   :  { %v604_v18 = vadd.f32 %v603_v16, %v602_v15  ;;  %v638_v19 = vpop.f32.mrb[3].mxu1 }
 0x140   :  { %v639_v20 = vadd.f32 %v638_v19, %v637_v17 }
 0x141   :  { %v390_v21 = vadd.f32 %v604_v18, %v320_v14 }
 0x143   :  { %v460_v22 = vadd.f32 %v639_v20, %v390_v21 }
 0x145   :  { %v476_v24 = vadd.f32 %v499_v23, %v460_v22 }
 0x147   :  { %v477_v25 = vmul.f32 %v476_v24, %v476_v24 }
 0x149   :  { %478 = vadd.xlane.f32.xlu0 %v477_v25 }
 0x1d6   :  { %v479_v26 = vpop.xlane.xlu0 %478 }
 0x1d7   :  { %774 = vrsqrt.f32 %v479_v26 }
 0x1e1   :  { %v775_v27 = vpop.eup %774 }
 0x1e2   :  { %v481_v28 = vmul.f32 %v775_v27, %v476_v24 }
 0x1e4   :  { %482 = vst [vmem:[#allocation7] sm:$0xff] %v481_v28 }
 0x1e5   :  { %831 = shalt.err (!%p828_p6)
}
 0x1e6   :  { %s832_s15 = scalar_lea.hbm %s922_s3, 128 }
 0x1e7   :  { %p833_p7 = scmp.ne.s32.totalorder %s922_s3, %s832_s15  ;;  %p836_p8 = scmp.lt.u32.totalorder %s832_s15, %s922_s3 }
 0x1e9   :  { %p838_p9 = pnand %p836_p8, %p833_p7 }
 0x1eb   :  { %841 = shalt.err (!%p838_p9)
}
 0x1ec   :  { %492 = dma.vmem_to_hbm [thread:$0]  %s490_s12, 128, %s922_s3, [#allocation4]  }
 0x1ed   :  { %846 = dma.done.wait [#allocation4], 128  }
 0x1ee   :  { %847 = vsyncadd [#allocation4], 4294967168 }
 0x1ef   :  { %496 = vsyncpa [#allocation3], 1 }
 0x1f0   :  { %497 = vsyncpa [#allocation6], 1 }
 0x1f1   :  { %498 = vsyncpa [#allocation4], 1 }

</bundles_post_ra>
